<compile_context>
chip_gen: v5e
topology: v5e:2x2
jax: 0.10.0
libtpu: 0.0.40
codegen_flags: <defaults>
</compile_context>

<pallas_src>
import functools

import jax
import jax.numpy as jnp
from jax.experimental import pallas as pl
from jax.experimental.pallas import tpu as pltpu

_LANES = 128


def _recip(x):
    # Approx reciprocal runs on the (otherwise idle) EUP; one Newton step
    # restores ~f32 accuracy.  The kernel is HBM-bound, so this is free.
    r = pl.reciprocal(x, approx=True)
    return r * (2.0 - x * r)


# ----------------------------------------------------------------------------
# Kernels.  Input block:  (1, P*sf2, TR, 128)  — plane p occupies rows
# [p*sf2, (p+1)*sf2) of axis 1; each of those sf2 rows is one fold quadrant.
# Output block: (1, 2*sf2, TR, 128)  — real plane then imag plane.
# splits_and_mean == mean over the sf2 quadrant rows (a leading axis);
# the sf x sf tiling of `div` == broadcast over that same axis.
# ----------------------------------------------------------------------------
def _fx_kernel_usrnet(alpha_ref, pin_ref, out_ref, *, sf2):
    """Specialized path: FCK = conj(FK), F2K real.  Planes: FKr FKi F2K FRr FRi."""
    alpha = alpha_ref[pl.program_id(0)]          # per-batch scalar from SMEM
    scale = (1.0 + alpha) / alpha                # folds the (1+alpha) epilogue
    inv_sf2 = 1.0 / float(sf2)

    def plane(p):
        return pin_ref[0, p * sf2:(p + 1) * sf2]   # (sf2, TR, 128)

    fk_r, fk_i, f2k, fr_r, fr_i = (plane(p) for p in range(5))

    # FK * FR (complex multiply)
    fkfr_r = fk_r * fr_r - fk_i * fr_i
    fkfr_i = fk_r * fr_i + fk_i * fr_r

    # mean over the sf*sf fold axis (leading axis here -> full-vreg adds).
    m_r = jnp.sum(fkfr_r, axis=0, keepdims=True) * inv_sf2
    m_i = jnp.sum(fkfr_i, axis=0, keepdims=True) * inv_sf2

    # F2K real -> real denominator.
    den = jnp.sum(f2k, axis=0, keepdims=True) * inv_sf2 + alpha
    inv_den = _recip(den)
    div_r = m_r * inv_den
    div_i = m_i * inv_den

    # FCK = conj(FK); the sf x sf tiling is a broadcast over the fold axis.
    num_r = fk_r * div_r + fk_i * div_i
    num_i = fk_r * div_i - fk_i * div_r

    out_ref[0, 0:sf2] = (fr_r - num_r) * scale
    out_ref[0, sf2:2 * sf2] = (fr_i - num_i) * scale


def _fx_kernel_general(alpha_ref, pin_ref, out_ref, *, sf2):
    """General path.  Planes: FKr FKi FCKr FCKi F2Kr F2Ki FRr FRi."""
    alpha = alpha_ref[pl.program_id(0)]
    scale = (1.0 + alpha) / alpha
    inv_sf2 = 1.0 / float(sf2)

    def plane(p):
        return pin_ref[0, p * sf2:(p + 1) * sf2]

    (fk_r, fk_i, fck_r, fck_i,
     f2k_r, f2k_i, fr_r, fr_i) = (plane(p) for p in range(8))

    fkfr_r = fk_r * fr_r - fk_i * fr_i
    fkfr_i = fk_r * fr_i + fk_i * fr_r

    m_r = jnp.sum(fkfr_r, axis=0, keepdims=True) * inv_sf2
    m_i = jnp.sum(fkfr_i, axis=0, keepdims=True) * inv_sf2
    d_r = jnp.sum(f2k_r, axis=0, keepdims=True) * inv_sf2 + alpha
    d_i = jnp.sum(f2k_i, axis=0, keepdims=True) * inv_sf2

    # complex division:  m / (d_r + i d_i)
    inv_den = _recip(d_r * d_r + d_i * d_i)
    div_r = (m_r * d_r + m_i * d_i) * inv_den
    div_i = (m_i * d_r - m_r * d_i) * inv_den

    num_r = fck_r * div_r - fck_i * div_i
    num_i = fck_r * div_i + fck_i * div_r

    out_ref[0, 0:sf2] = (fr_r - num_r) * scale
    out_ref[0, sf2:2 * sf2] = (fr_i - num_i) * scale


# ----------------------------------------------------------------------------
# Layout helpers: (B, P, C, H, W) <-> lane-dense folded (B, P*sf2, R, 128)
# (single XLA copy fusion: fold + plane stacking + lane padding).
# ----------------------------------------------------------------------------
def _fold_stack(planes, sf):
    B, P, C, H, W = planes.shape
    Hs, Ws = H // sf, W // sf
    N = C * Hs * Ws
    a = planes.reshape(B, P, C, sf, Hs, sf, Ws).transpose(0, 1, 3, 5, 2, 4, 6)
    a = a.reshape(B, P * sf * sf, N)
    R = -(-N // _LANES)
    pad = R * _LANES - N
    if pad:
        a = jnp.pad(a, ((0, 0), (0, 0), (0, pad)))
    return a.reshape(B, P * sf * sf, R, _LANES)


def _unfold_stack(a, sf, P, C, H, W):
    B = a.shape[0]
    Hs, Ws = H // sf, W // sf
    N = C * Hs * Ws
    a = a.reshape(B, P * sf * sf, -1)[..., :N]
    a = a.reshape(B, P, sf, sf, C, Hs, Ws).transpose(0, 1, 4, 2, 5, 3, 6)
    return a.reshape(B, P, C, H, W)


def _pick_row_tile(R, sf2, total_planes, budget_bytes=16 << 20, min_tiles=4):
    """Rows per grid step: double-buffered in+out tiles must fit `budget`,
    and (for large R) we aim for >= min_tiles steps along N so DMA/compute
    overlap and both v7x TensorCores stay busy even when B is 1 or odd."""
    per_row = 2 * total_planes * sf2 * _LANES * 4      # double-buffered B/row
    tr_budget = max(8, min(1024, (budget_bytes // per_row) // 8 * 8))
    if R > 8 * min_tiles:
        tr_pipe = max(8, (-(-R // min_tiles)) // 8 * 8)
    else:
        tr_pipe = R
    tr = min(tr_budget, tr_pipe)
    return R if R <= tr else tr


def datanet_forward(x, FK, FCK, F2K, FCKFSHy, alpha, sf, mask, *,
                    assume_usrnet=None):
    """Pallas TPU implementation of DataNet.forward (float32 / complex64)."""
    B, C, H, W = x.shape
    assert H % sf == 0 and W % sf == 0
    sf2 = sf * sf

    x = x.astype(jnp.float32)
    alpha = alpha.astype(jnp.float32)                  # (B, 1, 1, 1)
    alpha_vec = alpha.reshape(B)                       # per-batch scalar (SMEM)
    mask = mask.astype(jnp.float32)
    FK = FK.astype(jnp.complex64)
    FCK = FCK.astype(jnp.complex64)
    F2K = F2K.astype(jnp.complex64)
    FCKFSHy = FCKFSHy.astype(jnp.complex64)

    # USRNet algebra (FCK == conj(FK), F2K real) drops 3 of 8 input planes and
    # makes the division real.  Auto-detect on concrete inputs; fall back to
    # the fully general kernel when the operators are traced.
    if assume_usrnet is None:
        try:
            ok_fck = bool(jnp.allclose(FCK, jnp.conj(FK), rtol=1e-5, atol=1e-5))
            f2k_mag = float(jnp.max(jnp.abs(F2K)))
            ok_f2k = float(jnp.max(jnp.abs(jnp.imag(F2K)))) <= 1e-5 * (1.0 + f2k_mag)
            assume_usrnet = ok_fck and ok_f2k
        except jax.errors.ConcretizationTypeError:
            assume_usrnet = False

    # FFT glue (no Pallas FFT primitive).  Forming FR here halves the number
    # of complex planes crossing the Pallas boundary.
    FR = FCKFSHy + jnp.fft.fft2(alpha * x).astype(jnp.complex64)

    if assume_usrnet:
        plane_list = [jnp.real(FK), jnp.imag(FK), jnp.real(F2K),
                      jnp.real(FR), jnp.imag(FR)]
        kernel = functools.partial(_fx_kernel_usrnet, sf2=sf2)
    else:
        plane_list = [jnp.real(FK), jnp.imag(FK),
                      jnp.real(FCK), jnp.imag(FCK),
                      jnp.real(F2K), jnp.imag(F2K),
                      jnp.real(FR), jnp.imag(FR)]
        kernel = functools.partial(_fx_kernel_general, sf2=sf2)
    P = len(plane_list)

    # One fused copy: real/imag split + fold + plane stacking -> a single
    # lane-dense input stream (B, P*sf2, R, 128).
    planes = jnp.stack([p.astype(jnp.float32) for p in plane_list], axis=1)
    pin = _fold_stack(planes, sf)
    R = pin.shape[2]

    TR = _pick_row_tile(R, sf2, P + 2)
    grid = (B, pl.cdiv(R, TR))

    # Double-buffered in+out tile bytes; leave generous headroom for Mosaic's
    # elementwise intermediates, capped well below v7x's 64 MiB physical VMEM.
    vmem_need = 2 * (P + 2) * sf2 * TR * _LANES * 4
    vmem_limit = int(min(max(2 * vmem_need + (8 << 20), 24 << 20), 48 << 20))

    in_spec = pl.BlockSpec((1, P * sf2, TR, _LANES), lambda b, n: (b, 0, n, 0))
    out_spec = pl.BlockSpec((1, 2 * sf2, TR, _LANES), lambda b, n: (b, 0, n, 0))
    alpha_spec = pl.BlockSpec(memory_space=pltpu.MemorySpace.SMEM)

    fx = pl.pallas_call(
        kernel,
        grid=grid,
        in_specs=[alpha_spec, in_spec],
        out_specs=out_spec,
        out_shape=jax.ShapeDtypeStruct((B, 2 * sf2, R, _LANES), jnp.float32),
        compiler_params=pltpu.CompilerParams(
            dimension_semantics=("parallel", "parallel"),
            vmem_limit_bytes=vmem_limit),
    )(alpha_vec, pin)

    fx = _unfold_stack(fx, sf, 2, C, H, W)             # (B, 2, C, H, W)
    FX = (fx[:, 0] + 1j * fx[:, 1]).astype(jnp.complex64)
    # (1 + alpha) was already folded into the kernel's FX scale (IFFT is
    # linear); the remaining elementwise /(1+mask) is left to XLA to fuse.
    return (jnp.real(jnp.fft.ifft2(FX)) / (1.0 + mask)).astype(jnp.float32)


def datanet_reference(x, FK, FCK, F2K, FCKFSHy, alpha, sf, mask):
    """Pure-JAX reference (float32), mirrors the PyTorch forward."""
    x = x.astype(jnp.float32)
    alpha = alpha.astype(jnp.float32)

    def splits_and_mean(a):
        B, C, H, W = a.shape
        return jnp.mean(a.reshape(B, C, sf, H // sf, sf, W // sf), axis=(2, 4))

    FR = FCKFSHy + jnp.fft.fft2(alpha * x)
    d = splits_and_mean(FK * FR) / (splits_and_mean(F2K) + alpha)
    FX = (FR - FCK * jnp.tile(d, (1, 1, sf, sf))) / alpha
    return (jnp.real(jnp.fft.ifft2(FX)) * (1.0 + alpha) /
            (1.0 + mask)).astype(jnp.float32)


if __name__ == "__main__":
    B, C, H, W = 2, 4, 16, 16

    key = jax.random.PRNGKey(0)
    kx, kk1, kk2, ks1, ks2, ka, km = jax.random.split(key, 7)

    x = jax.random.normal(kx, (B, C, H, W), dtype=jnp.float32)
    # FK random complex; FCK = conj(FK); F2K = |FK|^2 (USRNet construction).
    fk_re = jax.random.normal(kk1, (B, C, H, W), dtype=jnp.float32)
    fk_im = jax.random.normal(kk2, (B, C, H, W), dtype=jnp.float32)
    FK = (fk_re + 1j * fk_im).astype(jnp.complex64)
    FCK = jnp.conj(FK)
    F2K = (FK * jnp.conj(FK)).astype(jnp.complex64)
    fsh_re = jax.random.normal(ks1, (B, C, H, W), dtype=jnp.float32)
    fsh_im = jax.random.normal(ks2, (B, C, H, W), dtype=jnp.float32)
    FCKFSHy = (fsh_re + 1j * fsh_im).astype(jnp.complex64)
    alpha = jax.random.uniform(ka, (B, 1, 1, 1), dtype=jnp.float32,
                               minval=0.5, maxval=1.5)
    mask = jax.random.uniform(km, (B, C, H, W), dtype=jnp.float32,
                              minval=0.0, maxval=1.0)

    # --- sf = 2, USRNet-constructed operators: auto-detect -> specialized path
    sf = 2
    ref = jax.block_until_ready(
        datanet_reference(x, FK, FCK, F2K, FCKFSHy, alpha, sf, mask))
    out = jax.block_until_ready(
        datanet_forward(x, FK, FCK, F2K, FCKFSHy, alpha, sf, mask))
    assert out.shape == (B, C, H, W) and out.dtype == jnp.float32
    assert jnp.allclose(out, ref, rtol=2e-3, atol=2e-3), (
        float(jnp.max(jnp.abs(out - ref))))

    # --- same data through the fully general kernel ---------------------------
    out_g = jax.block_until_ready(
        datanet_forward(x, FK, FCK, F2K, FCKFSHy, alpha, sf, mask,
                        assume_usrnet=False))
    assert jnp.allclose(out_g, ref, rtol=2e-3, atol=2e-3), (
        float(jnp.max(jnp.abs(out_g - ref))))

    # --- sf = 2, arbitrary (non-USRNet) FCK / F2K: auto-detect -> general path -
    FCK2 = FCK * (0.7 + 0.3j)
    F2K2 = F2K + 0.5
    ref2 = jax.block_until_ready(
        datanet_reference(x, FK, FCK2, F2K2, FCKFSHy, alpha, sf, mask))
    out2 = jax.block_until_ready(
        datanet_forward(x, FK, FCK2, F2K2, FCKFSHy, alpha, sf, mask))
    assert jnp.allclose(out2, ref2, rtol=2e-3, atol=2e-3), (
        float(jnp.max(jnp.abs(out2 - ref2))))

    # --- sf = 1 (denoising config): fold axis degenerates, layout stays dense -
    sf = 1
    ref1 = jax.block_until_ready(
        datanet_reference(x, FK, FCK, F2K, FCKFSHy, alpha, sf, mask))
    out1 = jax.block_until_ready(
        datanet_forward(x, FK, FCK, F2K, FCKFSHy, alpha, sf, mask))
    assert jnp.allclose(out1, ref1, rtol=2e-3, atol=2e-3), (
        float(jnp.max(jnp.abs(out1 - ref1))))

    print("KERNEL_OK")
</pallas_src>

<mosaic_0001>
module attributes {stable_mosaic.version = 11 : i64} {
  func.func @_fx_kernel_usrnet(%arg0: i32, %arg1: i32, %arg2: memref<2xf32, #tpu.memory_space<smem>>, %arg3: memref<1x20x2x128xf32, #tpu.memory_space<vmem>>, %arg4: memref<1x8x2x128xf32, #tpu.memory_space<vmem>>) attributes {dimension_semantics = [#tpu.dimension_semantics<parallel>, #tpu.dimension_semantics<parallel>], iteration_bounds = array<i64: 2, 1>, scalar_prefetch = 0 : i64, scratch_operands = 0 : i64, tpu.core_type = #tpu.core_type<tc>, window_params = [{transform_indices = @transform_0, window_bounds = array<i64: 2>}, {transform_indices = @transform_1, window_bounds = array<i64: 1, 20, 2, 128>}, {transform_indices = @transform_2, window_bounds = array<i64: 1, 8, 2, 128>}]} {
    %0 = arith.index_cast %arg0 : i32 to index
    %1 = memref.load %arg2[%0] : memref<2xf32, #tpu.memory_space<smem>>
    %cst = arith.constant 1.000000e+00 : f32
    %2 = arith.addf %cst, %1 : f32
    %3 = arith.divf %2, %1 : f32
    %c0 = arith.constant 0 : index
    %c0_0 = arith.constant 0 : index
    %c0_1 = arith.constant 0 : index
    %c0_2 = arith.constant 0 : index
    %4 = vector.load %arg3[%c0, %c0_0, %c0_1, %c0_2] : memref<1x20x2x128xf32, #tpu.memory_space<vmem>>, vector<1x4x2x128xf32>
    %5 = vector.shape_cast %4 : vector<1x4x2x128xf32> to vector<4x2x128xf32>
    %c0_3 = arith.constant 0 : index
    %c4 = arith.constant 4 : index
    %c0_4 = arith.constant 0 : index
    %c0_5 = arith.constant 0 : index
    %6 = vector.load %arg3[%c0_3, %c4, %c0_4, %c0_5] : memref<1x20x2x128xf32, #tpu.memory_space<vmem>>, vector<1x4x2x128xf32>
    %7 = vector.shape_cast %6 : vector<1x4x2x128xf32> to vector<4x2x128xf32>
    %c0_6 = arith.constant 0 : index
    %c8 = arith.constant 8 : index
    %c0_7 = arith.constant 0 : index
    %c0_8 = arith.constant 0 : index
    %8 = vector.load %arg3[%c0_6, %c8, %c0_7, %c0_8] : memref<1x20x2x128xf32, #tpu.memory_space<vmem>>, vector<1x4x2x128xf32>
    %9 = vector.shape_cast %8 : vector<1x4x2x128xf32> to vector<4x2x128xf32>
    %c0_9 = arith.constant 0 : index
    %c12 = arith.constant 12 : index
    %c0_10 = arith.constant 0 : index
    %c0_11 = arith.constant 0 : index
    %10 = vector.load %arg3[%c0_9, %c12, %c0_10, %c0_11] : memref<1x20x2x128xf32, #tpu.memory_space<vmem>>, vector<1x4x2x128xf32>
    %11 = vector.shape_cast %10 : vector<1x4x2x128xf32> to vector<4x2x128xf32>
    %c0_12 = arith.constant 0 : index
    %c16 = arith.constant 16 : index
    %c0_13 = arith.constant 0 : index
    %c0_14 = arith.constant 0 : index
    %12 = vector.load %arg3[%c0_12, %c16, %c0_13, %c0_14] : memref<1x20x2x128xf32, #tpu.memory_space<vmem>>, vector<1x4x2x128xf32>
    %13 = vector.shape_cast %12 : vector<1x4x2x128xf32> to vector<4x2x128xf32>
    %14 = arith.mulf %5, %11 : vector<4x2x128xf32>
    %15 = arith.mulf %7, %13 : vector<4x2x128xf32>
    %16 = arith.subf %14, %15 : vector<4x2x128xf32>
    %17 = arith.mulf %5, %13 : vector<4x2x128xf32>
    %18 = arith.mulf %7, %11 : vector<4x2x128xf32>
    %19 = arith.addf %17, %18 : vector<4x2x128xf32>
    %cst_15 = arith.constant dense<0.000000e+00> : vector<2x128xf32>
    %20 = vector.multi_reduction <add>, %16, %cst_15 [0] : vector<4x2x128xf32> to vector<2x128xf32>
    %21 = vector.shape_cast %20 : vector<2x128xf32> to vector<1x2x128xf32>
    %cst_16 = arith.constant 2.500000e-01 : f32
    %22 = vector.broadcast %cst_16 : f32 to vector<1x2x128xf32>
    %23 = arith.mulf %21, %22 : vector<1x2x128xf32>
    %cst_17 = arith.constant dense<0.000000e+00> : vector<2x128xf32>
    %24 = vector.multi_reduction <add>, %19, %cst_17 [0] : vector<4x2x128xf32> to vector<2x128xf32>
    %25 = vector.shape_cast %24 : vector<2x128xf32> to vector<1x2x128xf32>
    %cst_18 = arith.constant 2.500000e-01 : f32
    %26 = vector.broadcast %cst_18 : f32 to vector<1x2x128xf32>
    %27 = arith.mulf %25, %26 : vector<1x2x128xf32>
    %cst_19 = arith.constant dense<0.000000e+00> : vector<2x128xf32>
    %28 = vector.multi_reduction <add>, %9, %cst_19 [0] : vector<4x2x128xf32> to vector<2x128xf32>
    %29 = vector.shape_cast %28 : vector<2x128xf32> to vector<1x2x128xf32>
    %cst_20 = arith.constant 2.500000e-01 : f32
    %30 = vector.broadcast %cst_20 : f32 to vector<1x2x128xf32>
    %31 = arith.mulf %29, %30 : vector<1x2x128xf32>
    %32 = vector.broadcast %1 : f32 to vector<1x2x128xf32>
    %33 = arith.addf %31, %32 : vector<1x2x128xf32>
    %34 = tpu.reciprocal %33 {approx = true} : vector<1x2x128xf32> -> vector<1x2x128xf32>
    %35 = arith.mulf %33, %34 : vector<1x2x128xf32>
    %cst_21 = arith.constant 2.000000e+00 : f32
    %36 = vector.broadcast %cst_21 : f32 to vector<1x2x128xf32>
    %37 = arith.subf %36, %35 : vector<1x2x128xf32>
    %38 = arith.mulf %34, %37 : vector<1x2x128xf32>
    %39 = arith.mulf %23, %38 : vector<1x2x128xf32>
    %40 = arith.mulf %27, %38 : vector<1x2x128xf32>
    %41 = vector.broadcast %39 : vector<1x2x128xf32> to vector<4x2x128xf32>
    %42 = arith.mulf %5, %41 : vector<4x2x128xf32>
    %43 = vector.broadcast %40 : vector<1x2x128xf32> to vector<4x2x128xf32>
    %44 = arith.mulf %7, %43 : vector<4x2x128xf32>
    %45 = arith.addf %42, %44 : vector<4x2x128xf32>
    %46 = vector.broadcast %40 : vector<1x2x128xf32> to vector<4x2x128xf32>
    %47 = arith.mulf %5, %46 : vector<4x2x128xf32>
    %48 = vector.broadcast %39 : vector<1x2x128xf32> to vector<4x2x128xf32>
    %49 = arith.mulf %7, %48 : vector<4x2x128xf32>
    %50 = arith.subf %47, %49 : vector<4x2x128xf32>
    %51 = arith.subf %11, %45 : vector<4x2x128xf32>
    %52 = vector.broadcast %3 : f32 to vector<4x2x128xf32>
    %53 = arith.mulf %51, %52 : vector<4x2x128xf32>
    %c0_22 = arith.constant 0 : index
    %c0_23 = arith.constant 0 : index
    %c0_24 = arith.constant 0 : index
    %c0_25 = arith.constant 0 : index
    %54 = vector.load %arg4[%c0_22, %c0_23, %c0_24, %c0_25] : memref<1x8x2x128xf32, #tpu.memory_space<vmem>>, vector<1x4x2x128xf32>
    %55 = vector.shape_cast %54 : vector<1x4x2x128xf32> to vector<4x2x128xf32>
    %56 = vector.shape_cast %53 : vector<4x2x128xf32> to vector<1x4x2x128xf32>
    tpu.vector_store %arg4[%c0_22, %c0_23, %c0_24, %c0_25], %56 {strides = array<i32>} : memref<1x8x2x128xf32, #tpu.memory_space<vmem>>, vector<1x4x2x128xf32>,
    %57 = arith.subf %13, %50 : vector<4x2x128xf32>
    %58 = vector.broadcast %3 : f32 to vector<4x2x128xf32>
    %59 = arith.mulf %57, %58 : vector<4x2x128xf32>
    %c0_26 = arith.constant 0 : index
    %c4_27 = arith.constant 4 : index
    %c0_28 = arith.constant 0 : index
    %c0_29 = arith.constant 0 : index
    %60 = vector.load %arg4[%c0_26, %c4_27, %c0_28, %c0_29] : memref<1x8x2x128xf32, #tpu.memory_space<vmem>>, vector<1x4x2x128xf32>
    %61 = vector.shape_cast %60 : vector<1x4x2x128xf32> to vector<4x2x128xf32>
    %62 = vector.shape_cast %59 : vector<4x2x128xf32> to vector<1x4x2x128xf32>
    tpu.vector_store %arg4[%c0_26, %c4_27, %c0_28, %c0_29], %62 {strides = array<i32>} : memref<1x8x2x128xf32, #tpu.memory_space<vmem>>, vector<1x4x2x128xf32>,
    return
  }
  func.func @transform_0(%arg0: i32, %arg1: i32) -> i32 {
    %c0_i32 = arith.constant 0 : i32
    %c0_i32_0 = arith.constant 0 : i32
    return %c0_i32 : i32
  }
  func.func @transform_1(%arg0: i32, %arg1: i32) -> (i32, i32, i32, i32) {
    %c0_i32 = arith.constant 0 : i32
    %c0_i32_0 = arith.constant 0 : i32
    %c0_i32_1 = arith.constant 0 : i32
    return %arg0, %c0_i32, %arg1, %c0_i32_0 : i32, i32, i32, i32
  }
  func.func @transform_2(%arg0: i32, %arg1: i32) -> (i32, i32, i32, i32) {
    %c0_i32 = arith.constant 0 : i32
    %c0_i32_0 = arith.constant 0 : i32
    %c0_i32_1 = arith.constant 0 : i32
    return %arg0, %c0_i32, %arg1, %c0_i32_0 : i32, i32, i32, i32
  }
}

</mosaic_0001>

<bundles_post_ra>
// kernel: tpu_custom_call.1
= control target key start
LH: loop header
LB: loop body
LE: loop exit
PB: predicated region body
PF: predicated region fallthrough
CT: control target
= control target key end

     0   :  { %7 = vsyncpa [#allocation5], 0  ;;  %s1000_s0 = inlined_call_operand.hbm [shape: f32[2], index: 0, kind: input, shape index: {}]   ;;  %s1001_s1 = inlined_call_operand.hbm [shape: f32[2,20,2,128], index: 1, kind: input, shape index: {}]   ;;  %s1002_s2 = inlined_call_operand.hbm [shape: f32[2,8,2,128], index: 2, kind: output, shape index: {}]  }
   0x1   :  { %8 = vsyncpa [#allocation3], 0 }
   0x2   :  { %10 = vsyncpa [#allocation3 + $0x1], 0 }
   0x3   :  { %11 = vsyncpa [#allocation4], 0 }
   0x4   :  { %13 = vsyncpa [#allocation4 + $0x1], 0  ;;  %s733_s9 = smov 0   ;;  %s735_s10 = smov 0  }
   0x5   :  { %s737_s11 = smov 0   ;;  %s739_s12 = smov 0  }
   0x6   :  { %s741_s13 = smov 0   ;;  %s743_s14 = smov 0  }
   0x7 LB: > { %s459_s15 = sadd.s32 4294967295, %s711_s14   ;;  %s460_s16 = sadd.s32 4294967294, %s711_s14   ;;  %s711_s14 = sphi %s743_s14, %s19_s14   ;;  %s707_s13 = sphi %s741_s13, %s1014_s13   ;;  %s703_s12 = sphi %s739_s12, %s1013_s12   ;;  %s699_s11 = sphi %s737_s11, %s1012_s11   ;;  %s695_s10 = sphi %s735_s10, %s1011_s10   ;;  %s691_s9 = sphi %s733_s9, %s1010_s9  }
   0x8   : > { %s61_s17 = sadd.s32 1, %s699_s11  ;;  %p68_p0 = scmp.ne.s32.totalorder %s699_s11, %s695_s10 }
   0x9   : > { %p69_p1 = scmp.eq.s32.totalorder %s711_s14, 0  ;;  %p74_p2 = scmp.ne.s32.totalorder %s695_s10, %s691_s9 }
   0xa   : > { %p771_p3 = scmp.eq.s32.totalorder %s459_s15, 0  ;;  %p100_p4 = scmp.eq.s32.totalorder %s459_s15, 1 }
   0xb   : > { %p775_p5 = por %p69_p1, %p68_p0  ;;  %p106_p6 = scmp.eq.s32.totalorder %s460_s16, 1 }
   0xc   : > { %p781_p7 = por %p771_p3, %p74_p2  ;;  %p785_p8 = por %p100_p4, %p68_p0 }
   0xd   : > { %p789_p9 = por %p106_p6, %p74_p2  ;;  %p461_p10 = scmp.ge.s32.totalorder %s711_s14, 1 }
   0xe   : > { %p113_p11 = scmp.lt.s32.totalorder %s711_s14, 3  ;;  %s125_s25 = sshll.u32 %s1000_s0, 4  ;;  %s126_s25 = int_to_ptr.hbm [resolvable:$true] %s125_s25 }
   0xf   : > { %p463_p13 = scmp.ge.s32.totalorder %s711_s14, 2  ;;  %p520_p0 = scmp.lt.s32.totalorder %s711_s14, 2 }
  0x10   : > { %p798_p12 = pnand %p461_p10, %p113_p11  ;;  %s31_s28 = sadd.s32 1, %s707_s13 }
  0x11   : > { %p808_p2 = pnand %p520_p0, %p775_p5  ;;  %p33_p6 = scmp.ge.s32.totalorder %s31_s28, 2 }
  0x12   : > { %p507_p1 = pneg %p798_p12  ;;  %s136_s29 = sand.u32 1, %s699_s11  }
  0x13   : > { %s713_s30 = smov [#allocation2]   ;;  %s1016_s28 = smov (%p33_p6, %s31_s28), 0 }
  0x14   : > { %p508_p4 = pnand %p507_p1, %p771_p3  ;;  %s494_s3 = smul.u32 40, %s136_s29 }
  0x15   : > { %s56_s4 = ssub.s32 %s707_s13, %s1016_s28  ;;  %s495_s5 = smul.u32 40, %s707_s13 }
  0x16   : > { %510 = dma.hbm_to_smem (!%p508_p4), %s126_s25, 16, %s713_s30, [#allocation5]  }
  0x17   : > { %p59_p10 = scmp.eq.s32.totalorder %s56_s4, 0  ;;  %s146_s8 = scalar_lea.hbm %s1001_s1, %s495_s5 }
  0x18   : > { %s140_s15 = scalar_lea.vmem [#allocation6], %s494_s3  ;;  %s147_s23 = sshll.u32 %s146_s8, 4  ;;  %s148_s23 = int_to_ptr.hbm [resolvable:$true] %s147_s23 }
  0x19   : > { %s149_s16 = sshll.u32 %s140_s15, 4  ;;  %s137_s24 = scalar_lea.sflag [#allocation3], %s136_s29  ;;  %s150_s16 = int_to_ptr.vmem [resolvable:$true] %s149_s16 }
  0x1a   : > { %s827_s19 = scalar_select %p59_p10, %s699_s11, %s61_s17  }
  0x1b   : > { %s714_s25 = smov 32   ;;  %s715_s30 = smov 2  }
  0x1c   : > { %514 = dma.hbm_to_vmem [thread:$0]  (!%p808_p2), %s148_s23, 640, %s150_s16, %s137_s24, %s714_s25, %s714_s25, %s715_s30  }
  0x1d   : > { %161 = sbr.rel (%p798_p12) target bundleno = 132 (0x84), region = 28 }
  0x22   : > { %678 = dma.done.wait (%p771_p3), [#allocation5], 16  }
  0x23   : > { %680 = vsyncadd (%p771_p3), [#allocation5], 4294967280  ;;  %s838_s17 = sand.u32 1, %s695_s10  }
  0x24   : > { %s496_s29 = smul.u32 40, %s838_s17  ;;  %s169_s3 = scalar_lea.sflag [#allocation3], %s838_s17 }
  0x26   : > { %s842_s4 = scalar_lea.vmem [#allocation6], %s496_s29 }
  0x27   : > { %682 = dma.done.wait (%p781_p7), %s169_s3, 640  }
  0x28   : > { %684 = vsyncadd (%p781_p7), %s169_s3, 4294966656 }
  0x29   : > { %178 = sfence }
  0x2a   : > { %s849_s18 = sld [smem:[#allocation2 + %s703_s12]]  ;;  %v472_v1 = vld [vmem:[%s842_s4 + $0x10] sm:$0x3]  ;;  %v473_v2 = vld [vmem:[%s842_s4 + $0x12] sm:$0x3]  ;;  %vm262_vm0 = vcmask 1041408  }
  0x2b   : > { %v279_v6 = vsel %vm262_vm0, %v472_v1, 0.0  ;;  %v280_v7 = vsel %vm262_vm0, %v473_v2, 0.0  ;;  %v474_v10 = vld [vmem:[%s842_s4 + $0x14] sm:$0x3]  ;;  %v475_v16 = vld [vmem:[%s842_s4 + $0x16] sm:$0x3] }
  0x2c   : > { %v281_v13 = vadd.f32 %v280_v7, %v279_v6  ;;  %v282_v15 = vsel %vm262_vm0, %v474_v10, 0.0  ;;  %v284_v20 = vsel %vm262_vm0, %v475_v16, 0.0  ;;  %v861_v22 = vld [vmem:[%s842_s4] sm:$0x3]  ;;  %v864_v23 = vld [vmem:[%s842_s4 + $0x2] sm:$0x3] }
  0x2d   : > { %v867_v24 = vld [vmem:[%s842_s4 + $0x8] sm:$0x3]  ;;  %v870_v25 = vld [vmem:[%s842_s4 + $0xa] sm:$0x3]  ;;  %v873_v26 = vld [vmem:[%s842_s4 + $0x18] sm:$0x3] }
  0x2e   : > { %v283_v19 = vadd.f32 %v282_v15, %v281_v13  ;;  %v876_v27 = vld [vmem:[%s842_s4 + $0x1a] sm:$0x3]  ;;  %v879_v28 = vld [vmem:[%s842_s4 + $0x20] sm:$0x3]  ;;  %v882_v29 = vld [vmem:[%s842_s4 + $0x22] sm:$0x3]  ;;  %v238_v32 = vmul.f32 %v873_v26, %v861_v22  ;;  %v254_v41 = vmul.f32 %v873_v26, %v867_v24 }
  0x2f   : > { %v885_v31 = vld [vmem:[%s842_s4 + $0x4] sm:$0x3]  ;;  %v239_v33 = vmul.f32 %v876_v27, %v864_v23  ;;  %v242_v34 = vmul.f32 %v879_v28, %v867_v24  ;;  %v243_v35 = vmul.f32 %v882_v29, %v870_v25  ;;  %v896_v36 = vld [vmem:[%s842_s4 + $0xc] sm:$0x3]  ;;  %v899_v37 = vld [vmem:[%s842_s4 + $0x1c] sm:$0x3]  ;;  %v250_v39 = vmul.f32 %v879_v28, %v861_v22 }
  0x30   : > { %v197_v0 = vstv %s849_s18  ;;  %v285_v21 = vadd.f32 %v284_v20, %v283_v19  ;;  %v902_v38 = vld [vmem:[%s842_s4 + $0x24] sm:$0x3]  ;;  %v251_v40 = vmul.f32 %v882_v29, %v864_v23  ;;  %v255_v42 = vmul.f32 %v876_v27, %v870_v25  ;;  %v217_v44 = vld [vmem:[%s842_s4 + $0x6] sm:$0x3]  ;;  %v471_v45 = vld [vmem:[%s842_s4 + $0xe] sm:$0x3] }
  0x31   : > { %576 = vrcp.f32 %v197_v0  ;;  %v209_v5 = vand.u32 2147483648, %v197_v0  ;;  %vm203_vm1 = vweird.f32 %v197_v0  ;;  %v207_v9 = vand.u32 2147483647, %v197_v0  ;;  %v915_v46 = vld [vmem:[%s842_s4 + $0x1e] sm:$0x3]  ;;  %s196_s20 = sadd.f32 1.0, %s849_s18 }
  0x32   : > { %v286_v30 = vmul.f32 0.25, %v285_v21  ;;  %v240_v47 = vmul.f32 %v899_v37, %v885_v31  ;;  %v244_v48 = vmul.f32 %v902_v38, %v896_v36  ;;  %v246_v49 = vsub.f32 %v238_v32, %v242_v34  ;;  %v922_v51 = vld [vmem:[%s842_s4 + $0x26] sm:$0x3]  ;;  %s467_s26 = sshll.u32 %s838_s17, 4  ;;  %s493_s6 = sshll.u32 %s703_s12, 4 }
  0x33   : > { %v210_v12 = vor.u32 1.1754944e-38, %v209_v5  ;;  %vm208_vm4 = vcmp.eq.f32.partialorder %v207_v9, 8.507059e+37  ;;  %v247_v50 = vsub.f32 %v239_v33, %v243_v35  ;;  %v252_v52 = vmul.f32 %v902_v38, %v885_v31  ;;  %s358_s15 = scalar_lea.hbm %s1002_s2, %s493_s6  ;;  %s194_s16 = scalar_lea.vmem [#allocation7], %s467_s26 }
  0x34   : > { %v288_v43 = vadd.f32 %v286_v30, %v197_v0  ;;  %v256_v53 = vmul.f32 %v899_v37, %v896_v36  ;;  %v258_v54 = vadd.f32 %v254_v41, %v250_v39  ;;  %v259_v55 = vadd.f32 %v255_v42, %v251_v40  ;;  %s359_s12 = sshll.u32 %s194_s16, 4  ;;  %s361_s23 = sshll.u32 %s358_s15, 4  ;;  %s360_s12 = int_to_ptr.vmem [resolvable:$true] %s359_s12  ;;  %s362_s23 = int_to_ptr.hbm [resolvable:$true] %s361_s23 }
  0x35   : > { %v241_v56 = vmul.f32 %v915_v46, %v217_v44  ;;  %v257_v57 = vmul.f32 %v915_v46, %v471_v45  ;;  %v245_v58 = vmul.f32 %v922_v51, %v471_v45  ;;  %v248_v59 = vsub.f32 %v240_v47, %v244_v48  ;;  %s346_s24 = scalar_lea.sflag [#allocation4], %s838_s17  ;;  %s639_s25 = sshra.s32 %s362_s23, 4  ;;  %s640_s25 = int_to_ptr.hbm [resolvable:$true] %s639_s25 }
  0x36   : > { %578 = vrcp.f32 %v288_v43  ;;  %v263_v60 = vsel %vm262_vm0, %v246_v49, 0.0  ;;  %v264_v61 = vsel %vm262_vm0, %v247_v50, 0.0  ;;  %v253_v62 = vmul.f32 %v922_v51, %v217_v44  ;;  %s641_s30 = scalar_lea.hbm %s640_s25, 16  ;;  %s645_s4 = scalar_lea.hbm %s1002_s2, 32 }
  0x37   : > { %v577_v3 = vpop.eup %576  ;;  %v260_v63 = vadd.f32 %v256_v53, %v252_v52  ;;  %v272_v1 = vsel %vm262_vm0, %v259_v55, 0.0  ;;  %v265_v2 = vadd.f32 %v264_v61, %v263_v60  ;;  %v266_v5 = vsel %vm262_vm0, %v248_v59, 0.0  ;;  %p642_p3 = scmp.ne.s32.totalorder %s640_s25, %s641_s30  ;;  %p646_p11 = scmp.lt.s32.totalorder %s640_s25, %s1002_s2 }
  0x38   : > { %v199_v4 = vmul.f32 %v577_v3, %v197_v0  ;;  %vm204_vm2 = vweird.f32 %v577_v3  ;;  %v271_v0 = vsel %vm262_vm0, %v258_v54, 0.0  ;;  %v261_v7 = vadd.f32 %v257_v57, %v253_v62  ;;  %p647_p12 = scmp.lt.s32.totalorder %s645_s4, %s641_s30 }
  0x39   : > { %vm205_vm3 = vmor %vm203_vm1, %vm204_vm2  ;;  %v273_v6 = vadd.f32 %v272_v1, %v271_v0  ;;  %v267_v10 = vadd.f32 %v266_v5, %v265_v2  ;;  %p643_p5 = pnand %p642_p3, %p785_p8 }
  0x3a   : > { %v200_v8 = vsub.f32 1.0, %v199_v4  ;;  %v249_v4 = vsub.f32 %v241_v56, %v245_v58  ;;  %v276_v13 = vsel %vm262_vm0, %v261_v7, 0.0  ;;  %p648_p0 = por %p647_p12, %p646_p11 }
  0x3b   : > { %p644_p7 = pneg %p643_p5 }
  0x3c   : > { %v201_v11 = vmul.f32 %v577_v3, %v200_v8  ;;  %v274_v8 = vsel %vm262_vm0, %v260_v63, 0.0 }
  0x3d   : > { %p649_p1 = pnand %p648_p0, %p644_p7 }
  0x3e   : > { %v202_v14 = vadd.f32 %v577_v3, %v201_v11  ;;  %v268_v11 = vsel %vm262_vm0, %v249_v4, 0.0 }
  0x3f   : > { %v269_v15 = vadd.f32 %v268_v11, %v267_v10 }
  0x40   : > { %v206_v17 = vsel %vm205_vm3, %v577_v3, %v202_v14  ;;  %v579_v3 = vpop.eup %578 }
  0x41   : > { %v211_v18 = vsel %vm208_vm4, %v210_v12, %v206_v17  ;;  %v290_v9 = vmul.f32 %v579_v3, %v288_v43  ;;  %v275_v12 = vadd.f32 %v274_v8, %v273_v6 }
  0x42   : > { %497 = vpush %v211_v18  ;;  %v270_v18 = vmul.f32 0.25, %v269_v15 }
  0x43   : > { %v291_v14 = vsub.f32 2.0, %v290_v9  ;;  %v277_v16 = vadd.f32 %v276_v13, %v275_v12 }
  0x45   : > { %v292_v17 = vmul.f32 %v579_v3, %v291_v14  ;;  %v278_v19 = vmul.f32 0.25, %v277_v16 }
  0x47   : > { %v293_v20 = vmul.f32 %v292_v17, %v270_v18  ;;  %v294_v21 = vmul.f32 %v292_v17, %v278_v19 }
  0x49   : > { %v295_v30 = vmul.f32 %v293_v20, %v861_v22  ;;  %v296_v32 = vmul.f32 %v293_v20, %v864_v23  ;;  %v297_v33 = vmul.f32 %v293_v20, %v885_v31  ;;  %v299_v34 = vmul.f32 %v867_v24, %v294_v21 }
  0x4a   : > { %v300_v35 = vmul.f32 %v870_v25, %v294_v21  ;;  %v301_v39 = vmul.f32 %v896_v36, %v294_v21  ;;  %v298_v40 = vmul.f32 %v293_v20, %v217_v44  ;;  %v302_v41 = vmul.f32 %v471_v45, %v294_v21 }
  0x4b   : > { %v307_v42 = vmul.f32 %v294_v21, %v861_v22  ;;  %v311_v43 = vmul.f32 %v867_v24, %v293_v20  ;;  %v308_v47 = vmul.f32 %v294_v21, %v864_v23  ;;  %v309_v48 = vmul.f32 %v294_v21, %v885_v31 }
  0x4c   : > { %v312_v49 = vmul.f32 %v870_v25, %v293_v20  ;;  %v303_v50 = vadd.f32 %v299_v34, %v295_v30  ;;  %v304_v52 = vadd.f32 %v300_v35, %v296_v32  ;;  %v305_v53 = vadd.f32 %v301_v39, %v297_v33 }
  0x4d   : > { %v313_v54 = vmul.f32 %v896_v36, %v293_v20  ;;  %v306_v55 = vadd.f32 %v302_v41, %v298_v40  ;;  %v310_v56 = vmul.f32 %v294_v21, %v217_v44  ;;  %v314_v57 = vmul.f32 %v471_v45, %v293_v20 }
  0x4e   : > { %v315_v58 = vsub.f32 %v307_v42, %v311_v43  ;;  %v316_v22 = vsub.f32 %v308_v47, %v312_v49  ;;  %v319_v23 = vsub.f32 %v873_v26, %v303_v50  ;;  %v320_v31 = vsub.f32 %v876_v27, %v304_v52 }
  0x4f   : > { %v317_v24 = vsub.f32 %v309_v48, %v313_v54  ;;  %v321_v25 = vsub.f32 %v899_v37, %v305_v53  ;;  %v318_v59 = vsub.f32 %v310_v56, %v314_v57  ;;  %v322_v36 = vsub.f32 %v915_v46, %v306_v55 }
  0x50   : > { %v332_v60 = vsub.f32 %v879_v28, %v315_v58  ;;  %v333_v45 = vsub.f32 %v882_v29, %v316_v22 }
  0x51   : > { %v334_v0 = vsub.f32 %v902_v38, %v317_v24  ;;  %v335_v27 = vsub.f32 %v922_v51, %v318_v59 }
  0x73   : > { %s498_s27 = spop %497 }
  0x74   : > { %s213_s5 = smul.f32 %s498_s27, %s196_s20 }
  0x76   : > { %v323_v44 = vstv %s213_s5 }
  0x77   : > { %v324_v61 = vmul.f32 %v323_v44, %v319_v23  ;;  %v325_v62 = vmul.f32 %v323_v44, %v320_v31  ;;  %v326_v63 = vmul.f32 %v323_v44, %v321_v25  ;;  %v327_v26 = vmul.f32 %v323_v44, %v322_v36 }
  0x78   : > { %v336_v37 = vmul.f32 %v332_v60, %v323_v44  ;;  %v337_v28 = vmul.f32 %v333_v45, %v323_v44  ;;  %v338_v29 = vmul.f32 %v334_v0, %v323_v44  ;;  %v339_v38 = vmul.f32 %v335_v27, %v323_v44 }
  0x79   : > { %328 = vst [vmem:[%s194_s16] sm:$0x3] %v324_v61 }
  0x7a   : > { %329 = vst [vmem:[%s194_s16 + $0x2] sm:$0x3] %v325_v62 }
  0x7b   : > { %330 = vst [vmem:[%s194_s16 + $0x4] sm:$0x3] %v326_v63 }
  0x7c   : > { %331 = vst [vmem:[%s194_s16 + $0x6] sm:$0x3] %v327_v26 }
  0x7d   : > { %484 = vst [vmem:[%s194_s16 + $0x8] sm:$0x3] %v336_v37 }
  0x7e   : > { %485 = vst [vmem:[%s194_s16 + $0xa] sm:$0x3] %v337_v28 }
  0x7f   : > { %486 = vst [vmem:[%s194_s16 + $0xc] sm:$0x3] %v338_v29 }
  0x80   : > { %487 = vst [vmem:[%s194_s16 + $0xe] sm:$0x3] %v339_v38 }
  0x81   : > { %652 = shalt.err (!%p649_p1)
}
  0x82   : > { %s716_s17 = smov 32   ;;  %s717_s26 = smov 2  }
  0x83   : > { %505 = dma.vmem_to_hbm [thread:$0]  (%p785_p8), %s360_s12, 256, %s362_s23, %s346_s24, %s716_s17, %s716_s17, %s717_s26  }
  0x84 PF: > { %s376_s27 = sand.u32 1, %s691_s9   ;;  %p516_p2 = pnand %p463_p13, %p789_p9 }
  0x85   : > { %s377_s5 = scalar_lea.sflag [#allocation4], %s376_s27 }
  0x86   : > { %p517_p4 = pneg %p516_p2 }
  0x88   : > { %686 = dma.done.wait (%p517_p4), %s377_s5, 256  }
  0x89   : > { %688 = vsyncadd (%p517_p4), %s377_s5, 4294967040  ;;  %s19_s14 = sadd.s32 1, %s711_s14   ;;  %s1010_s9 = smov %s695_s10 }
  0x8a   : > { %p16_p6 = scmp.ge.s32.totalorder %s19_s14, 4   ;;  %s1011_s10 = smov %s699_s11 }
  0x8b   : > { %s1012_s11 = smov %s827_s19  ;;  %s1013_s12 = smov %s707_s13 }
  0x8c   : > { %s1014_s13 = smov %s1016_s28  ;;  %18 = sbr.rel (!%p16_p6) target bundleno = 7 (0x7), region = 83 }
  0x91   :  { %383 = vsyncpa [#allocation3], 1 }
  0x92   :  { %385 = vsyncpa [#allocation3 + $0x1], 1 }
  0x93   :  { %386 = vsyncpa [#allocation4], 1 }
  0x94   :  { %388 = vsyncpa [#allocation4 + $0x1], 1 }
  0x95   :  { %389 = vsyncpa [#allocation5], 1 }
  0x96   :  { %391 = vsyncpa [#allocation5 + $0x1], 1 }

</bundles_post_ra>
